<compile_context>
chip_gen: v6e
topology: v6e:2x2x1
jax: 0.10.0
libtpu: 0.0.40
codegen_flags: <defaults>
</compile_context>

<pallas_src>
import functools
import math

import jax
import jax.numpy as jnp
from jax.experimental import pallas as pl
from jax.experimental.pallas import tpu as pltpu


# ----------------------------- kernels ------------------------------------


def _noisy_linear_train_kernel(x_ref, wmu_ref, wsig_ref, eps_out_ref, eps_in_ref,
                               bias_ref, o_ref, acc_ref, *, use_bf16):
    k = pl.program_id(2)

    @pl.when(k == 0)
    def _():
        acc_ref[...] = jnp.zeros_like(acc_ref)

    # Noise math in f32 (v5e VPU has no bf16); weights may arrive as bf16 from
    # the wrapper (halved HBM stream) and are upcast here on the VPU.
    wmu = wmu_ref[...].astype(jnp.float32)
    wsig = wsig_ref[...].astype(jnp.float32)
    # wmu + (wsig * eps_in_row) * eps_out_col : row broadcast (sublanes, cheap)
    # first, single lane-broadcast second; no (tn,tk) outer-product temp.
    w = wmu + (wsig * eps_in_ref[...]) * eps_out_ref[...]

    x = x_ref[...]
    if use_bf16:
        x = x.astype(jnp.bfloat16)
        w = w.astype(jnp.bfloat16)

    # x (tm, tk) · w (tn, tk) contracted over k — transposed-RHS dot, no
    # explicit transpose; f32 accumulation on the MXU.
    acc_ref[...] += jax.lax.dot_general(
        x, w,
        dimension_numbers=(((1,), (1,)), ((), ())),
        preferred_element_type=jnp.float32)

    @pl.when(k == pl.num_programs(2) - 1)
    def _():
        o_ref[...] = (acc_ref[...] + bias_ref[...]).astype(o_ref.dtype)


def _noisy_linear_eval_kernel(x_ref, wmu_ref, bias_ref, o_ref, acc_ref, *, use_bf16):
    k = pl.program_id(2)

    @pl.when(k == 0)
    def _():
        acc_ref[...] = jnp.zeros_like(acc_ref)

    x = x_ref[...]
    w = wmu_ref[...]            # already bf16 if use_bf16 (cast in wrapper)
    if use_bf16:
        x = x.astype(jnp.bfloat16)

    acc_ref[...] += jax.lax.dot_general(
        x, w,
        dimension_numbers=(((1,), (1,)), ((), ())),
        preferred_element_type=jnp.float32)

    @pl.when(k == pl.num_programs(2) - 1)
    def _():
        o_ref[...] = (acc_ref[...] + bias_ref[...]).astype(o_ref.dtype)


# ----------------------------- helpers -------------------------------------


def _round_up(x, m):
    return ((x + m - 1) // m) * m


def _pick_tile(dim_pad, target, min_blocks=1):
    """Largest multiple-of-128 divisor of dim_pad that is <= target, preferring
    configurations with at least `min_blocks` grid blocks along this axis."""
    units = dim_pad // 128
    fallback = 128
    for d in range(units, 0, -1):
        if units % d != 0:
            continue
        tile = d * 128
        if tile > target:
            continue
        if dim_pad // tile >= min_blocks:
            return tile
        fallback = max(fallback, tile)
    return fallback


# --------- one-time (outside the hot path) parameter preparation -----------


def prepare_noisy_linear_params(weight_mu, weight_sigma, eps_out, eps_in,
                                bias_mu, bias_sigma, bias_epsilon, *,
                                use_bf16_matmul=False):
    """Pad params to 128-aligned shapes ONCE (at init / param-update time) and
    optionally cast the big weight matrices to bf16 for HBM streaming.  The
    per-call wrapper then only pads the activations."""
    out_f, in_f = weight_mu.shape
    K_pad = _round_up(in_f, 128)
    N_pad = _round_up(out_f, 128)
    w_dtype = jnp.bfloat16 if use_bf16_matmul else jnp.float32

    wmu = jnp.pad(weight_mu, ((0, N_pad - out_f), (0, K_pad - in_f))).astype(w_dtype)
    wsig = jnp.pad(weight_sigma, ((0, N_pad - out_f), (0, K_pad - in_f))).astype(w_dtype)
    eo = jnp.pad(eps_out, (0, N_pad - out_f)).astype(jnp.float32).reshape(N_pad, 1)
    ei = jnp.pad(eps_in, (0, K_pad - in_f)).astype(jnp.float32).reshape(1, K_pad)

    bias_noisy = (bias_mu + bias_sigma * bias_epsilon).astype(jnp.float32)
    bias_noisy = jnp.pad(bias_noisy, (0, N_pad - out_f)).reshape(1, N_pad)
    bias_eval = jnp.pad(bias_mu.astype(jnp.float32), (0, N_pad - out_f)).reshape(1, N_pad)

    return dict(wmu=wmu, wsig=wsig, eps_out=eo, eps_in=ei,
                bias_noisy=bias_noisy, bias_eval=bias_eval,
                in_features=in_f, out_features=out_f,
                K_pad=K_pad, N_pad=N_pad,
                use_bf16_matmul=use_bf16_matmul)


# ------------------------------ forward ------------------------------------


def noisy_linear(x, params, *, training=True,
                 tm_target=512, tn_target=512, tk_target=1024):
    """Pallas NoisyLinear forward.  x: (B, in_features) f32; params from
    prepare_noisy_linear_params()."""
    B, in_f = x.shape
    assert in_f == params["in_features"]
    out_f = params["out_features"]
    K_pad = params["K_pad"]
    N_pad = params["N_pad"]
    use_bf16 = params["use_bf16_matmul"]
    dtype = x.dtype

    # ---- M tiling: cover the whole (padded) batch in one tile when possible
    # so the weight matrices are streamed from HBM exactly once.
    B_pad = _round_up(B, 8)
    if B_pad <= tm_target:
        tm = B_pad
    else:
        tm = _round_up(tm_target, 8)
        B_pad = _round_up(B_pad, tm)
    m_blocks = B_pad // tm

    # ---- N/K tiling: divisor-aware (no padding beyond 128 alignment).  If
    # the batch fits a single M tile, prefer >=2 N blocks for megacore (v7x).
    tn = _pick_tile(N_pad, tn_target, min_blocks=2 if m_blocks == 1 else 1)
    tk = _pick_tile(K_pad, tk_target, min_blocks=1)

    # Only the (cheap) activation pad happens per call.
    xp = jnp.pad(x, ((0, B_pad - B), (0, K_pad - in_f)))

    grid = (B_pad // tm, N_pad // tn, K_pad // tk)

    x_spec = pl.BlockSpec((tm, tk), lambda i, j, k: (i, k))
    w_spec = pl.BlockSpec((tn, tk), lambda i, j, k: (j, k))
    bias_spec = pl.BlockSpec((1, tn), lambda i, j, k: (0, j))
    out_spec = pl.BlockSpec((tm, tn), lambda i, j, k: (i, j))

    # VMEM budget: double-buffered x + weight streams + out, plus the acc
    # scratch and small vectors.  Cap at 64 MiB so v7x (64 MiB physical/TC)
    # stays safe; floor at 32 MiB so v5e's 16 MiB scoped default isn't binding.
    w_bytes = 2 if use_bf16 else 4
    n_w_streams = 2 if training else 1
    vmem_est = (2 * tm * tk * 4
                + n_w_streams * 2 * tn * tk * w_bytes
                + 2 * tm * tn * 4
                + tm * tn * 4
                + 2 * (tn + tk + tn) * 4 * 2)
    vmem_limit = min(max(int(vmem_est * 1.5), 32 << 20), 64 << 20)

    compiler_params = pltpu.CompilerParams(
        dimension_semantics=("parallel", "parallel", "arbitrary"),
        vmem_limit_bytes=vmem_limit)
    out_shape = jax.ShapeDtypeStruct((B_pad, N_pad), dtype)
    scratch = [pltpu.VMEM((tm, tn), jnp.float32)]

    if training:
        kernel = functools.partial(_noisy_linear_train_kernel, use_bf16=use_bf16)
        out = pl.pallas_call(
            kernel,
            out_shape=out_shape,
            grid_spec=pltpu.PrefetchScalarGridSpec(
                num_scalar_prefetch=0,
                grid=grid,
                in_specs=[
                    x_spec,                                         # x
                    w_spec,                                         # weight_mu
                    w_spec,                                         # weight_sigma
                    pl.BlockSpec((tn, 1), lambda i, j, k: (j, 0)),  # eps_out col
                    pl.BlockSpec((1, tk), lambda i, j, k: (0, k)),  # eps_in row
                    bias_spec,                                      # noisy bias
                ],
                out_specs=out_spec,
                scratch_shapes=scratch),
            compiler_params=compiler_params,
        )(xp, params["wmu"], params["wsig"], params["eps_out"],
          params["eps_in"], params["bias_noisy"])
    else:
        # Eval fast path: only weight_mu / bias_mu are streamed from HBM.
        kernel = functools.partial(_noisy_linear_eval_kernel, use_bf16=use_bf16)
        out = pl.pallas_call(
            kernel,
            out_shape=out_shape,
            grid_spec=pltpu.PrefetchScalarGridSpec(
                num_scalar_prefetch=0,
                grid=grid,
                in_specs=[x_spec, w_spec, bias_spec],
                out_specs=out_spec,
                scratch_shapes=scratch),
            compiler_params=compiler_params,
        )(xp, params["wmu"], params["bias_eval"])

    return out[:B, :out_f]


# ------------- deterministic parameter / noise init (mirrors __init__) -----


def scale_noise(key, size):
    # x = randn(size); x = sign(x) * sqrt(|x|)
    x = jax.random.normal(key, (size,), dtype=jnp.float32)
    return jnp.sign(x) * jnp.sqrt(jnp.abs(x))


def init_noisy_linear(key, in_features, out_features, std_init=0.4):
    k1, k2, k3, k4, k5 = jax.random.split(key, 5)
    mu_range = 1.0 / math.sqrt(in_features)
    weight_mu = jax.random.uniform(k1, (out_features, in_features),
                                   minval=-mu_range, maxval=mu_range,
                                   dtype=jnp.float32)
    weight_sigma = jnp.full((out_features, in_features),
                            std_init / math.sqrt(in_features), dtype=jnp.float32)
    bias_mu = jax.random.uniform(k2, (out_features,),
                                 minval=-mu_range, maxval=mu_range,
                                 dtype=jnp.float32)
    bias_sigma = jnp.full((out_features,),
                          std_init / math.sqrt(out_features), dtype=jnp.float32)
    # reset_noise(): factorized Gaussian noise — kept factorized for the kernel.
    eps_in = scale_noise(k3, in_features)
    eps_out = scale_noise(k4, out_features)
    bias_epsilon = scale_noise(k5, out_features)
    return (weight_mu, weight_sigma, eps_out, eps_in,
            bias_mu, bias_sigma, bias_epsilon)


def noisy_linear_ref(x, wmu, wsig, weps, bmu, bsig, beps, training=True):
    if training:
        w = wmu + wsig * weps
        b = bmu + bsig * beps
    else:
        w, b = wmu, bmu
    return x @ w.T + b


if __name__ == "__main__":
    key = jax.random.PRNGKey(0)
    k_params, k_x = jax.random.split(key)

    batch, in_features, out_features = 8, 32, 16
    (weight_mu, weight_sigma, eps_out, eps_in,
     bias_mu, bias_sigma, bias_epsilon) = init_noisy_linear(
        k_params, in_features, out_features, std_init=0.4)
    x = jax.random.normal(k_x, (batch, in_features), dtype=jnp.float32)

    # Reference uses the materialized outer-product epsilon (PyTorch semantics).
    weight_epsilon = jnp.outer(eps_out, eps_in)
    ref_train = noisy_linear_ref(x, weight_mu, weight_sigma, weight_epsilon,
                                 bias_mu, bias_sigma, bias_epsilon, training=True)
    ref_eval = noisy_linear_ref(x, weight_mu, weight_sigma, weight_epsilon,
                                bias_mu, bias_sigma, bias_epsilon, training=False)

    # --- f32 weight streaming ---
    params_f32 = prepare_noisy_linear_params(
        weight_mu, weight_sigma, eps_out, eps_in,
        bias_mu, bias_sigma, bias_epsilon, use_bf16_matmul=False)

    y_train = noisy_linear(x, params_f32, training=True)
    y_train = jax.block_until_ready(y_train)
    assert y_train.shape == (batch, out_features)
    assert jnp.allclose(y_train, ref_train, atol=1e-5, rtol=1e-5), \
        "train-mode mismatch vs reference"

    y_eval = noisy_linear(x, params_f32, training=False)
    y_eval = jax.block_until_ready(y_eval)
    assert jnp.allclose(y_eval, ref_eval, atol=1e-5, rtol=1e-5), \
        "eval-mode mismatch vs reference"

    # --- bf16 weight streaming + bf16 operands at the MXU (f32 accumulation) ---
    params_bf16 = prepare_noisy_linear_params(
        weight_mu, weight_sigma, eps_out, eps_in,
        bias_mu, bias_sigma, bias_epsilon, use_bf16_matmul=True)

    y_bf16 = noisy_linear(x, params_bf16, training=True)
    y_bf16 = jax.block_until_ready(y_bf16)
    assert jnp.allclose(y_bf16, ref_train, atol=5e-2, rtol=5e-2), \
        "bf16 train-mode mismatch vs reference (beyond bf16 tolerance)"

    y_bf16_eval = noisy_linear(x, params_bf16, training=False)
    y_bf16_eval = jax.block_until_ready(y_bf16_eval)
    assert jnp.allclose(y_bf16_eval, ref_eval, atol=5e-2, rtol=5e-2), \
        "bf16 eval-mode mismatch vs reference (beyond bf16 tolerance)"

    # TODO(synk): optional fp8 weight-streaming variant for v7x (MXU fp8) left out.
    print("KERNEL_OK")
</pallas_src>

<mosaic_0001>
module attributes {stable_mosaic.version = 11 : i64} {
  func.func @_noisy_linear_train_kernel(%arg0: i32, %arg1: i32, %arg2: i32, %arg3: memref<8x128xf32, #tpu.memory_space<vmem>>, %arg4: memref<128x128xf32, #tpu.memory_space<vmem>>, %arg5: memref<128x128xf32, #tpu.memory_space<vmem>>, %arg6: memref<128x1xf32, #tpu.memory_space<vmem>>, %arg7: memref<1x128xf32, #tpu.memory_space<vmem>>, %arg8: memref<1x128xf32, #tpu.memory_space<vmem>>, %arg9: memref<8x128xf32, #tpu.memory_space<vmem>>, %arg10: memref<8x128xf32, #tpu.memory_space<vmem>>) attributes {dimension_semantics = [#tpu.dimension_semantics<parallel>, #tpu.dimension_semantics<parallel>, #tpu.dimension_semantics<arbitrary>], iteration_bounds = array<i64: 1, 1, 1>, scalar_prefetch = 0 : i64, scratch_operands = 1 : i64, tpu.core_type = #tpu.core_type<tc>, window_params = [{transform_indices = @transform_0, window_bounds = array<i64: 8, 128>}, {transform_indices = @transform_1, window_bounds = array<i64: 128, 128>}, {transform_indices = @transform_2, window_bounds = array<i64: 128, 128>}, {transform_indices = @transform_3, window_bounds = array<i64: 128, 1>}, {transform_indices = @transform_4, window_bounds = array<i64: 1, 128>}, {transform_indices = @transform_5, window_bounds = array<i64: 1, 128>}, {transform_indices = @transform_6, window_bounds = array<i64: 8, 128>}]} {
    %c0_i32 = arith.constant 0 : i32
    %0 = arith.cmpi eq, %arg2, %c0_i32 : i32
    %1 = arith.extui %0 : i1 to i32
    %c0_i32_0 = arith.constant 0 : i32
    %2 = arith.cmpi ne, %1, %c0_i32_0 : i32
    scf.if %2 {
      %cst_16 = arith.constant 0.000000e+00 : f32
      %20 = vector.broadcast %cst_16 : f32 to vector<8x128xf32>
      %c0_17 = arith.constant 0 : index
      %c0_18 = arith.constant 0 : index
      %21 = vector.load %arg10[%c0_17, %c0_18] : memref<8x128xf32, #tpu.memory_space<vmem>>, vector<8x128xf32>
      tpu.vector_store %arg10[%c0_17, %c0_18], %20 {strides = array<i32>} : memref<8x128xf32, #tpu.memory_space<vmem>>, vector<8x128xf32>,
    } else {
    }
    %c0 = arith.constant 0 : index
    %c0_1 = arith.constant 0 : index
    %3 = vector.load %arg4[%c0, %c0_1] : memref<128x128xf32, #tpu.memory_space<vmem>>, vector<128x128xf32>
    %c0_2 = arith.constant 0 : index
    %c0_3 = arith.constant 0 : index
    %4 = vector.load %arg5[%c0_2, %c0_3] : memref<128x128xf32, #tpu.memory_space<vmem>>, vector<128x128xf32>
    %c0_4 = arith.constant 0 : index
    %c0_5 = arith.constant 0 : index
    %5 = vector.load %arg7[%c0_4, %c0_5] : memref<1x128xf32, #tpu.memory_space<vmem>>, vector<1x128xf32>
    %6 = vector.broadcast %5 : vector<1x128xf32> to vector<128x128xf32>
    %7 = arith.mulf %4, %6 : vector<128x128xf32>
    %c0_6 = arith.constant 0 : index
    %c0_7 = arith.constant 0 : index
    %8 = vector.load %arg6[%c0_6, %c0_7] : memref<128x1xf32, #tpu.memory_space<vmem>>, vector<128x1xf32>
    %9 = vector.broadcast %8 : vector<128x1xf32> to vector<128x128xf32>
    %10 = arith.mulf %7, %9 : vector<128x128xf32>
    %11 = arith.addf %3, %10 : vector<128x128xf32>
    %c0_8 = arith.constant 0 : index
    %c0_9 = arith.constant 0 : index
    %12 = vector.load %arg3[%c0_8, %c0_9] : memref<8x128xf32, #tpu.memory_space<vmem>>, vector<8x128xf32>
    %c0_10 = arith.constant 0 : index
    %c0_11 = arith.constant 0 : index
    %13 = vector.load %arg10[%c0_10, %c0_11] : memref<8x128xf32, #tpu.memory_space<vmem>>, vector<8x128xf32>
    %cst = arith.constant dense<0.000000e+00> : vector<8x128xf32>
    %14 = tpu.matmul %12, %11, %cst {dimension_numbers = #tpu.dot_dimension_numbers<[1], [1], [0], [0], [0, 0, 1, 0], [], []>} : vector<8x128xf32>, vector<128x128xf32>, vector<8x128xf32> -> vector<8x128xf32>
    %15 = arith.addf %13, %14 : vector<8x128xf32>
    %c0_12 = arith.constant 0 : index
    %c0_13 = arith.constant 0 : index
    %16 = vector.load %arg10[%c0_12, %c0_13] : memref<8x128xf32, #tpu.memory_space<vmem>>, vector<8x128xf32>
    tpu.vector_store %arg10[%c0_12, %c0_13], %15 {strides = array<i32>} : memref<8x128xf32, #tpu.memory_space<vmem>>, vector<8x128xf32>,
    %c0_i32_14 = arith.constant 0 : i32
    %17 = arith.cmpi eq, %arg2, %c0_i32_14 : i32
    %18 = arith.extui %17 : i1 to i32
    %c0_i32_15 = arith.constant 0 : i32
    %19 = arith.cmpi ne, %18, %c0_i32_15 : i32
    scf.if %19 {
      %c0_16 = arith.constant 0 : index
      %c0_17 = arith.constant 0 : index
      %20 = vector.load %arg10[%c0_16, %c0_17] : memref<8x128xf32, #tpu.memory_space<vmem>>, vector<8x128xf32>
      %c0_18 = arith.constant 0 : index
      %c0_19 = arith.constant 0 : index
      %21 = vector.load %arg8[%c0_18, %c0_19] : memref<1x128xf32, #tpu.memory_space<vmem>>, vector<1x128xf32>
      %22 = vector.broadcast %21 : vector<1x128xf32> to vector<8x128xf32>
      %23 = arith.addf %20, %22 : vector<8x128xf32>
      %c0_20 = arith.constant 0 : index
      %c0_21 = arith.constant 0 : index
      %24 = vector.load %arg9[%c0_20, %c0_21] : memref<8x128xf32, #tpu.memory_space<vmem>>, vector<8x128xf32>
      tpu.vector_store %arg9[%c0_20, %c0_21], %23 {strides = array<i32>} : memref<8x128xf32, #tpu.memory_space<vmem>>, vector<8x128xf32>,
    } else {
    }
    return
  }
  func.func @transform_0(%arg0: i32, %arg1: i32, %arg2: i32) -> (i32, i32) {
    %c0_i32 = arith.constant 0 : i32
    return %arg0, %arg2 : i32, i32
  }
  func.func @transform_1(%arg0: i32, %arg1: i32, %arg2: i32) -> (i32, i32) {
    %c0_i32 = arith.constant 0 : i32
    return %arg1, %arg2 : i32, i32
  }
  func.func @transform_2(%arg0: i32, %arg1: i32, %arg2: i32) -> (i32, i32) {
    %c0_i32 = arith.constant 0 : i32
    return %arg1, %arg2 : i32, i32
  }
  func.func @transform_3(%arg0: i32, %arg1: i32, %arg2: i32) -> (i32, i32) {
    %c0_i32 = arith.constant 0 : i32
    %c0_i32_0 = arith.constant 0 : i32
    return %arg1, %c0_i32 : i32, i32
  }
  func.func @transform_4(%arg0: i32, %arg1: i32, %arg2: i32) -> (i32, i32) {
    %c0_i32 = arith.constant 0 : i32
    %c0_i32_0 = arith.constant 0 : i32
    return %c0_i32, %arg2 : i32, i32
  }
  func.func @transform_5(%arg0: i32, %arg1: i32, %arg2: i32) -> (i32, i32) {
    %c0_i32 = arith.constant 0 : i32
    %c0_i32_0 = arith.constant 0 : i32
    return %c0_i32, %arg1 : i32, i32
  }
  func.func @transform_6(%arg0: i32, %arg1: i32, %arg2: i32) -> (i32, i32) {
    %c0_i32 = arith.constant 0 : i32
    return %arg0, %arg1 : i32, i32
  }
}

</mosaic_0001>

<bundles_post_ra>
// kernel: tpu_custom_call.1
= control target key start
LH: loop header
LB: loop body
LE: loop exit
PB: predicated region body
PF: predicated region fallthrough
CT: control target
= control target key end

     0   :  { %11 = vsyncpa [#allocation4], 0  ;;  %s660_s0 = inlined_call_operand.hbm [shape: f32[8,128], index: 0, kind: input, shape index: {}]   ;;  %s661_s1 = inlined_call_operand.vmem [shape: f32[128,128], index: 1, kind: input, shape index: {}]   ;;  %s662_s2 = inlined_call_operand.hbm [shape: f32[128,128], index: 2, kind: input, shape index: {}]   ;;  %s663_s3 = inlined_call_operand.vmem [shape: f32[128,1], index: 3, kind: input, shape index: {}]   ;;  %s664_s4 = inlined_call_operand.vmem [shape: f32[1,128], index: 4, kind: input, shape index: {}]   ;;  %s665_s5 = inlined_call_operand.vmem [shape: f32[1,128], index: 5, kind: input, shape index: {}]   ;;  %s666_s6 = inlined_call_operand.hbm [shape: f32[8,128], index: 6, kind: output, shape index: {}]  }
   0x1   :  { %12 = vsyncpa [#allocation7], 0 }
   0x2   :  { %13 = vsyncpa [#allocation5], 0  ;;  %s471_s21 = smov [#allocation3]   ;;  %s472_s23 = smov [#allocation6]  }
   0x3   :  { %s20_s22 = sshll.u32 %s471_s21, 4  ;;  %s31_s24 = sshll.u32 %s472_s23, 4  ;;  %s21_s22 = int_to_ptr.vmem [resolvable:$true] %s20_s22  ;;  %s32_s24 = int_to_ptr.vmem [resolvable:$true] %s31_s24 }
   0x4   :  { %s413_s25 = scalar_lea.vmem %s21_s22, 128  ;;  %p418_p1 = scmp.lt.s32.totalorder %s21_s22, %s21_s22 }
   0x5   :  { %p414_p0 = scmp.ne.s32.totalorder %s21_s22, %s413_s25  ;;  %p419_p2 = scmp.lt.s32.totalorder %s413_s25, %s413_s25 }
   0x7   :  { %p420_p3 = por %p419_p2, %p418_p1 }
   0x9   :  { %p421_p4 = pnand %p420_p3, %p414_p0 }
   0xb   :  { %424 = shalt.err (!%p421_p4)
}
   0xc   :  { %23 = dma.hbm_to_vmem [thread:$0]  %s660_s0, 128, %s21_s22, [#allocation4]  }
   0xd   :  { %s433_s28 = scalar_lea.vmem %s32_s24, 2048  ;;  %p438_p6 = scmp.lt.s32.totalorder %s32_s24, %s32_s24 }
   0xe   :  { %p434_p5 = scmp.ne.s32.totalorder %s32_s24, %s433_s28  ;;  %p439_p7 = scmp.lt.s32.totalorder %s433_s28, %s433_s28 }
  0x10   :  { %p440_p8 = por %p439_p7, %p438_p6 }
  0x12   :  { %p441_p9 = pnand %p440_p8, %p434_p5 }
  0x14   :  { %444 = shalt.err (!%p441_p9)
}
  0x15   :  { %s473_s29 = smov 128   ;;  %s474_s30 = smov 8  }
  0x16   :  { %37 = dma.hbm_to_vmem [thread:$0]  %s662_s2, 2048, %s32_s24, [#allocation7], %s473_s29, %s473_s29, %s474_s30  }
  0x17   :  { %465 = dma.done.wait [#allocation4], 128  }
  0x18   :  { %466 = vsyncadd [#allocation4], 4294967168 }
  0x19   :  { %467 = dma.done.wait [#allocation7], 2048  }
  0x1a   :  { %468 = vsyncadd [#allocation7], 4294965248  ;;  %v475_v0 = vmov 0   ;;  %v125_v1 = vld [vmem:[%s663_s3 + $0x78] sm:$0xff]  ;;  %v123_v2 = vld [vmem:[%s663_s3 + $0x68] sm:$0xff]  ;;  %v476_v3 = vmov 0.0  }
  0x1b   :  { %404 = vset.pattern.permute.xlu1 %v475_v0  ;;  %403 = vset.pattern.permute.xlu0 %v475_v0  ;;  %v124_v4 = vld [vmem:[%s663_s3 + $0x70] sm:$0xff]  ;;  %v122_v5 = vld [vmem:[%s663_s3 + $0x60] sm:$0xff]  ;;  %v121_v6 = vld [vmem:[%s663_s3 + $0x58] sm:$0xff]  ;;  %vm477_vm0 = vmmov 0   ;;  %s478_s19 = smov [#allocation8]  }
  0x1c   :  { %360 = vmatprep.subr.mxu0 %v476_v3  ;;  %203 = vperm.xlu0 %403, %v125_v1   ;;  %v120_v7 = vld [vmem:[%s663_s3 + $0x50] sm:$0xff]  ;;  %v119_v8 = vld [vmem:[%s663_s3 + $0x48] sm:$0xff]  ;;  %v118_v9 = vld [vmem:[%s663_s3 + $0x40] sm:$0xff]  ;;  %s331_s20 = sshll.u32 %s478_s19, 4  ;;  %s332_s20 = int_to_ptr.vmem [resolvable:$true] %s331_s20 }
  0x1d   :  { %193 = vperm.xlu1 %404, %v123_v2   ;;  %v117_v10 = vld [vmem:[%s663_s3 + $0x38] sm:$0xff]  ;;  %v116_v11 = vld [vmem:[%s663_s3 + $0x30] sm:$0xff]  ;;  %v115_v12 = vld [vmem:[%s663_s3 + $0x28] sm:$0xff]  ;;  %392 = vmatprep.mubr.msk.f32.mxu0 %vm477_vm0, %v476_v3  ;;  %s445_s21 = scalar_lea.vmem %s332_s20, 128  ;;  %p450_p11 = scmp.lt.s32.totalorder %s332_s20, %s332_s20 }
  0x1e   :  { %v114_v13 = vld [vmem:[%s663_s3 + $0x20] sm:$0xff]  ;;  %v113_v14 = vld [vmem:[%s663_s3 + $0x18] sm:$0xff]  ;;  %v112_v15 = vld [vmem:[%s663_s3 + $0x10] sm:$0xff]  ;;  %p446_p10 = scmp.ne.s32.totalorder %s332_s20, %s445_s21  ;;  %p451_p12 = scmp.lt.s32.totalorder %s445_s21, %s445_s21 }
  0x1f   :  { %v111_v16 = vld [vmem:[%s663_s3 + $0x8] sm:$0xff]  ;;  %v110_v17 = vld [vmem:[%s663_s3] sm:$0xff]  ;;  %v84_v21 = vld [vmem:[#allocation6 + $0x68] sm:$0xff] }
  0x20   :  { %198 = vperm.xlu0 %403, %v124_v4   ;;  %v86_v18 = vld [vmem:[#allocation6 + $0x78] sm:$0xff]  ;;  %v85_v22 = vld [vmem:[#allocation6 + $0x70] sm:$0xff]  ;;  %v69_v31 = vld [vmem:[%s661_s1 + $0x70] sm:$0xff]  ;;  %p452_p13 = por %p451_p12, %p450_p11 }
  0x21   :  { %188 = vperm.xlu1 %404, %v122_v5   ;;  %v573_v19 = vld [vmem:[%s664_s4] ss:$0 sm:$0xff]  ;;  %v70_v24 = vld [vmem:[%s661_s1 + $0x78] sm:$0xff]  ;;  %v83_v32 = vld [vmem:[#allocation6 + $0x60] sm:$0xff] }
  0x22   :  { %v109_v20 = vmul.f32 %v573_v19, %v86_v18  ;;  %v107_v26 = vmul.f32 %v573_v19, %v84_v21  ;;  %v108_v27 = vmul.f32 %v573_v19, %v85_v22  ;;  %v68_v35 = vld [vmem:[%s661_s1 + $0x68] sm:$0xff]  ;;  %v106_v37 = vmul.f32 %v573_v19, %v83_v32  ;;  %v82_v38 = vld [vmem:[#allocation6 + $0x58] sm:$0xff]  ;;  %v81_v45 = vld [vmem:[#allocation6 + $0x50] sm:$0xff]  ;;  %p453_p0 = pnand %p452_p13, %p446_p10 }
  0x23   :  { %v105_v42 = vmul.f32 %v573_v19, %v82_v38  ;;  %v67_v43 = vld [vmem:[%s661_s1 + $0x60] sm:$0xff]  ;;  %v104_v48 = vmul.f32 %v573_v19, %v81_v45  ;;  %v66_v49 = vld [vmem:[%s661_s1 + $0x58] sm:$0xff]  ;;  %v80_v51 = vld [vmem:[#allocation6 + $0x48] sm:$0xff] }
  0x24   :  { %183 = vperm.xlu0 %403, %v121_v6   ;;  %v103_v54 = vmul.f32 %v573_v19, %v80_v51  ;;  %v65_v55 = vld [vmem:[%s661_s1 + $0x50] sm:$0xff]  ;;  %v79_v57 = vld [vmem:[#allocation6 + $0x40] sm:$0xff]  ;;  %v78_v63 = vld [vmem:[#allocation6 + $0x38] sm:$0xff] }
  0x25   :  { %178 = vperm.xlu1 %404, %v120_v7   ;;  %v102_v60 = vmul.f32 %v573_v19, %v79_v57  ;;  %v64_v61 = vld [vmem:[%s661_s1 + $0x48] sm:$0xff]  ;;  %v101_v2 = vmul.f32 %v573_v19, %v78_v63  ;;  %v63_v4 = vld [vmem:[%s661_s1 + $0x40] sm:$0xff]  ;;  %v77_v6 = vld [vmem:[#allocation6 + $0x30] sm:$0xff] }
  0x26   :  { %v75_v18 = vld [vmem:[#allocation6 + $0x20] sm:$0xff]  ;;  %v55_v51 = vld [vmem:[%s661_s1] sm:$0xff] }
  0x27   :  { %v98_v22 = vmul.f32 %v573_v19, %v75_v18 }
  0x28   :  { %173 = vperm.xlu0 %403, %v119_v8  }
  0x29   :  { %168 = vperm.xlu1 %404, %v118_v9   ;;  %v100_v9 = vmul.f32 %v573_v19, %v77_v6 }
  0x2c   :  { %163 = vperm.xlu0 %403, %v117_v10   ;;  %v62_v10 = vld [vmem:[%s661_s1 + $0x38] sm:$0xff] }
  0x2d   :  { %158 = vperm.xlu1 %404, %v116_v11  }
  0x30   :  { %153 = vperm.xlu0 %403, %v115_v12   ;;  %v76_v12 = vld [vmem:[#allocation6 + $0x28] sm:$0xff] }
  0x31   :  { %148 = vperm.xlu1 %404, %v114_v13  }
  0x34   :  { %143 = vperm.xlu0 %403, %v113_v14  }
  0x35   :  { %138 = vperm.xlu1 %404, %v112_v15   ;;  %v99_v15 = vmul.f32 %v573_v19, %v76_v12 }
  0x38   :  { %133 = vperm.xlu0 %403, %v111_v16   ;;  %v61_v16 = vld [vmem:[%s661_s1 + $0x30] sm:$0xff] }
  0x39   :  { %128 = vperm.xlu1 %404, %v110_v17  }
  0x97   :  { %v204_v23 = vpop.permute.xlu0 %203 }
  0x98   :  { %v221_v25 = vmul.f32 %v204_v23, %v109_v20  ;;  %v194_v29 = vpop.permute.xlu1 %193  ;;  %v60_v23 = vld [vmem:[%s661_s1 + $0x28] sm:$0xff] }
  0x99   :  { %v219_v33 = vmul.f32 %v194_v29, %v107_v26  ;;  %v59_v29 = vld [vmem:[%s661_s1 + $0x20] sm:$0xff] }
  0x9a   :  { %v237_v28 = vadd.f32 %v221_v25, %v70_v24  ;;  %v74_v25 = vld [vmem:[#allocation6 + $0x18] sm:$0xff] }
  0x9b   :  { %v199_v30 = vpop.permute.xlu0 %198  ;;  %v235_v39 = vadd.f32 %v219_v33, %v68_v35  ;;  %v58_v35 = vld [vmem:[%s661_s1 + $0x18] sm:$0xff] }
  0x9c   :  { %v220_v34 = vmul.f32 %v199_v30, %v108_v27  ;;  %361 = vmatpush3.xpose.msra.mxu0 %v237_v28  ;;  %v189_v40 = vpop.permute.xlu1 %188  ;;  %v97_v28 = vmul.f32 %v573_v19, %v74_v25 }
  0x9d   :  { %362 = vmatprep.subr.mxu0 %v476_v3  ;;  %v218_v41 = vmul.f32 %v189_v40, %v106_v37  ;;  %v72_v37 = vld [vmem:[#allocation6 + $0x8] sm:$0xff] }
  0x9e   :  { %v236_v36 = vadd.f32 %v220_v34, %v69_v31  ;;  %v73_v31 = vld [vmem:[#allocation6 + $0x10] sm:$0xff]  ;;  %v95_v40 = vmul.f32 %v573_v19, %v72_v37 }
  0x9f   :  { %v184_v44 = vpop.permute.xlu0 %183  ;;  %v234_v46 = vadd.f32 %v218_v41, %v67_v43  ;;  %v96_v34 = vmul.f32 %v573_v19, %v73_v31  ;;  %v57_v41 = vld [vmem:[%s661_s1 + $0x10] sm:$0xff]  ;;  %v71_v43 = vld [vmem:[#allocation6] sm:$0xff] }
  0xa0   :  { %363 = vmatpush3.xpose.msra.mxu0 %v236_v36  ;;  %v217_v47 = vmul.f32 %v184_v44, %v105_v42  ;;  %v179_v50 = vpop.permute.xlu1 %178 }
  0xa1   :  { %364 = vmatprep.subr.mxu0 %v476_v3  ;;  %v216_v53 = vmul.f32 %v179_v50, %v104_v48 }
  0xa2   :  { %v233_v52 = vadd.f32 %v217_v47, %v66_v49  ;;  %v56_v47 = vld [vmem:[%s661_s1 + $0x8] sm:$0xff] }
  0xa3   :  { %v174_v56 = vpop.permute.xlu0 %173  ;;  %v232_v58 = vadd.f32 %v216_v53, %v65_v55  ;;  %v342_v53 = vld [vmem:[%s665_s5] ss:$0 sm:$0xff] }
  0xa4   :  { %365 = vmatpush3.xpose.msra.mxu0 %v235_v39  ;;  %v215_v59 = vmul.f32 %v174_v56, %v103_v54  ;;  %v169_v62 = vpop.permute.xlu1 %168 }
  0xa5   :  { %366 = vmatprep.subr.mxu0 %v476_v3  ;;  %v214_v1 = vmul.f32 %v169_v62, %v102_v60 }
  0xa6   :  { %v231_v0 = vadd.f32 %v215_v59, %v64_v61 }
  0xa7   :  { %v164_v5 = vpop.permute.xlu0 %163  ;;  %v230_v7 = vadd.f32 %v214_v1, %v63_v4 }
  0xa8   :  { %367 = vmatpush3.xpose.msra.mxu0 %v234_v46  ;;  %v213_v8 = vmul.f32 %v164_v5, %v101_v2  ;;  %v159_v11 = vpop.permute.xlu1 %158  ;;  %v94_v46 = vmul.f32 %v573_v19, %v71_v43  ;;  %v238_v19 = vld [vmem:[#allocation3] sm:$0xff] }
  0xa9   :  { %368 = vmatprep.subr.mxu0 %v476_v3  ;;  %v212_v14 = vmul.f32 %v159_v11, %v100_v9 }
  0xaa   :  { %v229_v13 = vadd.f32 %v213_v8, %v62_v10 }
  0xab   :  { %v154_v17 = vpop.permute.xlu0 %153  ;;  %v228_v20 = vadd.f32 %v212_v14, %v61_v16 }
  0xac   :  { %369 = vmatpush3.xpose.msra.mxu0 %v233_v52  ;;  %v211_v21 = vmul.f32 %v154_v17, %v99_v15  ;;  %v149_v24 = vpop.permute.xlu1 %148 }
  0xad   :  { %370 = vmatprep.subr.mxu0 %v476_v3  ;;  %v210_v27 = vmul.f32 %v149_v24, %v98_v22 }
  0xae   :  { %v227_v26 = vadd.f32 %v211_v21, %v60_v23 }
  0xaf   :  { %v144_v30 = vpop.permute.xlu0 %143  ;;  %v226_v32 = vadd.f32 %v210_v27, %v59_v29 }
  0xb0   :  { %371 = vmatpush3.xpose.msra.mxu0 %v232_v58  ;;  %v209_v33 = vmul.f32 %v144_v30, %v97_v28  ;;  %v139_v36 = vpop.permute.xlu1 %138 }
  0xb1   :  { %372 = vmatprep.subr.mxu0 %v476_v3  ;;  %v208_v39 = vmul.f32 %v139_v36, %v96_v34 }
  0xb2   :  { %v225_v38 = vadd.f32 %v209_v33, %v58_v35 }
  0xb3   :  { %v134_v42 = vpop.permute.xlu0 %133  ;;  %v224_v44 = vadd.f32 %v208_v39, %v57_v41 }
  0xb4   :  { %373 = vmatpush3.xpose.msra.mxu0 %v231_v0  ;;  %v207_v45 = vmul.f32 %v134_v42, %v95_v40  ;;  %v129_v48 = vpop.permute.xlu1 %128 }
  0xb5   :  { %374 = vmatprep.subr.mxu0 %v476_v3  ;;  %v206_v50 = vmul.f32 %v129_v48, %v94_v46 }
  0xb6   :  { %v223_v49 = vadd.f32 %v207_v45, %v56_v47 }
  0xb7   :  { %v222_v52 = vadd.f32 %v206_v50, %v55_v51 }
  0xb8   :  { %375 = vmatpush3.xpose.msra.mxu0 %v230_v7 }
  0xb9   :  { %376 = vmatprep.subr.mxu0 %v476_v3 }
  0xbc   :  { %377 = vmatpush3.xpose.msra.mxu0 %v229_v13 }
  0xbd   :  { %378 = vmatprep.subr.mxu0 %v476_v3 }
  0xc0   :  { %379 = vmatpush3.xpose.msra.mxu0 %v228_v20 }
  0xc1   :  { %380 = vmatprep.subr.mxu0 %v476_v3 }
  0xc4   :  { %381 = vmatpush3.xpose.msra.mxu0 %v227_v26 }
  0xc5   :  { %382 = vmatprep.subr.mxu0 %v476_v3 }
  0xc8   :  { %383 = vmatpush3.xpose.msra.mxu0 %v226_v32 }
  0xc9   :  { %384 = vmatprep.subr.mxu0 %v476_v3 }
  0xcc   :  { %385 = vmatpush3.xpose.msra.mxu0 %v225_v38 }
  0xcd   :  { %386 = vmatprep.subr.mxu0 %v476_v3 }
  0xd0   :  { %387 = vmatpush3.xpose.msra.mxu0 %v224_v44 }
  0xd1   :  { %388 = vmatprep.subr.mxu0 %v476_v3 }
  0xd4   :  { %389 = vmatpush3.xpose.msra.mxu0 %v223_v49 }
  0xd5   :  { %390 = vmatprep.subr.mxu0 %v476_v3 }
  0xd8   :  { %391 = vmatpush3.xpose.msra.mxu0 %v222_v52 }
  0xdb   :  { %393 = vmatmul.mubr.f32.vlgmr.msra.gmra.mxu0 %v238_v19 }
 0x19b   :  { %v306_v54 = vpop.f32.mrf.mxu0 }
 0x19c   :  { %v323_v55 = vadd.f32 %v342_v53, %v306_v54 }
 0x19d   :  { %v394_v56 = vpop.f32.mrf.mxu0 }
 0x19e   :  { %324 = vst [vmem:[#allocation8] sm:$0xff] %v323_v55 }
 0x19f   :  { %456 = shalt.err (!%p453_p0)
}
 0x1a0   :  { %334 = dma.vmem_to_hbm [thread:$0]  %s332_s20, 128, %s666_s6, [#allocation5]  }
 0x1a1   :  { %469 = dma.done.wait [#allocation5], 128  }
 0x1a2   :  { %470 = vsyncadd [#allocation5], 4294967168 }
 0x1a3   :  { %338 = vsyncpa [#allocation4], 1 }
 0x1a4   :  { %339 = vsyncpa [#allocation7], 1 }
 0x1a5   :  { %340 = vsyncpa [#allocation5], 1 }

</bundles_post_ra>
